<compile_context>
chip_gen: v7x
topology: tpu7x:2x2x1
jax: 0.10.0
libtpu: 0.0.40
codegen_flags: <defaults>
</compile_context>

<pallas_src>
import functools

import jax
import jax.numpy as jnp
import numpy as np
from jax import lax
from jax.experimental import pallas as pl
from jax.experimental.pallas import tpu as pltpu

_SQRT1_2 = 0.7071067811865476


# ----------------------------------------------------------------------------
# In-kernel helpers
# ----------------------------------------------------------------------------
def _gelu(z):
    # exact (erf-based) GELU, matching nn.GELU() default.
    return 0.5 * z * (1.0 + lax.erf(z * _SQRT1_2))


def _instnorm_ct(g):
    # g: (C, T) fp32 -- InstanceNorm1d: per-channel mean/var over time (lanes).
    mean = jnp.mean(g, axis=1, keepdims=True)
    cen = g - mean
    var = jnp.mean(cen * cen, axis=1, keepdims=True)
    return cen * lax.rsqrt(var + 1e-5)


def _shift_time(v, off, T):
    """v: (C, T). Returns s with s[:, t] = v[:, t + off] if 0 <= t+off < T else 0.

    Built from a static lane slice + concat with zeros (stays in registers /
    XLU; no VMEM scratch round trip).  pltpu.roll + iota mask is an equivalent
    alternative."""
    if off == 0:
        return v
    C = v.shape[0]
    if abs(off) >= T:
        return jnp.zeros_like(v)
    zeros = jnp.zeros((C, abs(off)), v.dtype)
    if off > 0:
        return jnp.concatenate([v[:, off:], zeros], axis=1)
    return jnp.concatenate([zeros, v[:, :T + off]], axis=1)


# ----------------------------------------------------------------------------
# Fused Pallas kernel: full network forward for Bblk batch elements.
# ----------------------------------------------------------------------------
def _fused_net_kernel(*refs, Bblk, T, K, dil0, dils, fuse_taps):
    """refs = (x, r_row, w0, b0, [bw, bb, cw, cb] * n_layers, out)."""
    n_layers = len(dils)
    x_ref, r_ref, w0_ref, b0_ref = refs[:4]
    layer_refs = refs[4:4 + 4 * n_layers]
    o_ref = refs[4 + 4 * n_layers]

    c = (K - 1) // 2
    r = r_ref[...]                      # (1, T)   PartialConv edge ratio
    b0 = b0_ref[...]                    # (Cout, 1)
    w0 = w0_ref[...]                    # (K, Cout, Cin)  tap-major
    lw = [ref[...] for ref in layer_refs]

    for b in range(Bblk):               # Bblk is small & static (unrolled)
        xb = x_ref[b]                   # (Cin, T)

        # ---- layer0: PartialConv1d with the all-ones mask constant-folded ---
        # update_mask == 1 exactly (centre tap always valid), so the output is
        #   conv_nobias(x) * ratio(t) + bias.
        raw = jnp.dot(w0[0], _shift_time(xb, -c * dil0, T),
                      preferred_element_type=jnp.float32)
        for k in range(1, K):
            raw = raw + jnp.dot(w0[k], _shift_time(xb, (k - c) * dil0, T),
                                preferred_element_type=jnp.float32)
        h = _instnorm_ct(_gelu(raw * r + b0))                 # (Cout, T)

        # ---- residual bottleneck blocks (stride = 1) -------------------------
        for i in range(n_layers):
            bw, bb, cw, cb = lw[4 * i:4 * i + 4]
            dil = dils[i]

            # 1x1 bottleneck conv == plain matmul.
            z = jnp.dot(bw, h, preferred_element_type=jnp.float32) + bb

            if fuse_taps:
                # K taps fused into one MXU dot: (Cout,K*bneck)x(K*bneck,T).
                cols = jnp.concatenate(
                    [_shift_time(z, (k - c) * dil, T) for k in range(K)],
                    axis=0)
                y = jnp.dot(cw, cols, preferred_element_type=jnp.float32) + cb
            else:
                # Fallback (bneck not sublane-aligned): accumulate K dots,
                # initialised with the first tap (no zero materialisation).
                y = jnp.dot(cw[0], _shift_time(z, -c * dil, T),
                            preferred_element_type=jnp.float32)
                for k in range(1, K):
                    y = y + jnp.dot(cw[k], _shift_time(z, (k - c) * dil, T),
                                    preferred_element_type=jnp.float32)
                y = y + cb

            h = _instnorm_ct(_gelu(y + h))       # residual add + act + norm

        o_ref[b] = h.astype(o_ref.dtype)         # NCW directly


# ----------------------------------------------------------------------------
# Trace-time constant folding of the PartialConv all-ones mask path.
# ----------------------------------------------------------------------------
def _partialconv_ratio_row(T, Cin, K, dil):
    """mask == ones  =>  update_mask == 1 exactly; only the ratio row survives."""
    pad = (K - 1) // 2 * dil
    n_valid = np.zeros((T,), np.float32)
    for t in range(T):
        for k in range(K):
            p = t - pad + k * dil
            if 0 <= p < T:
                n_valid[t] += 1.0
    um = np.float32(Cin) * n_valid
    ratio = np.float32(Cin * K) / (um + np.float32(1e-8))
    return ratio.reshape(1, T).astype(np.float32)


# ----------------------------------------------------------------------------
# Public wrapper: PyTorch NCW (B, Cin, T) in -> NCW (B, Cout, T) out.
# ----------------------------------------------------------------------------
def dilated_conv_net_forward(params, x_nct, *, dilation=1, stride=1):
    # TODO(synk): strided final block (stride != 1) not implemented.
    assert stride == 1, "stride != 1 not supported by the Pallas kernel"

    B, Cin, T = x_nct.shape
    w0 = params["layer0"]["w"]
    b0 = params["layer0"]["b"]
    Cout, _, K = w0.shape
    layers = params["layers"]
    n_layers = len(layers)
    bneck = layers[0]["bottle_w"].shape[0] if n_layers else 8
    dils = tuple(dilation * (2 ** i) for i in range(n_layers))
    fuse_taps = (bneck % 8 == 0)          # aligned sublane concat -> 1 fused dot

    x = x_nct.astype(jnp.float32)

    # ---- batch blocking: amortise grid overhead; keep grid >= 2 for v7x -----
    per_sample_bytes = 4 * T * (K * max(Cin, bneck) + 4 * Cout
                                + 2 * bneck + 2 * Cin)
    if B == 1:
        Bblk = 1
    else:
        vmem_cap = max(1, (4 << 20) // max(per_sample_bytes, 1))
        Bblk = max(1, min(-(-B // 2), 8, vmem_cap))
    G = -(-B // Bblk)
    B_pad = G * Bblk
    if B_pad > B:
        x = jnp.pad(x, ((0, B_pad - B), (0, 0), (0, 0)))

    # ---- hoisted weight preprocessing (matmul-ready, no per-step work) ------
    r_row = jnp.asarray(_partialconv_ratio_row(T, Cin, K, dilation))   # (1, T)
    w0_3d = jnp.transpose(w0, (2, 0, 1)).astype(jnp.float32)           # (K, Cout, Cin)
    b0_col = b0.reshape(Cout, 1).astype(jnp.float32)

    flat_w = []
    in_specs = [
        pl.BlockSpec((Bblk, Cin, T), lambda b: (b, 0, 0)),             # x
        pl.BlockSpec((1, T), lambda b: (0, 0)),                        # ratio row
        pl.BlockSpec((K, Cout, Cin), lambda b: (0, 0, 0)),             # w0
        pl.BlockSpec((Cout, 1), lambda b: (0, 0)),                     # b0
    ]
    for lyr in layers:
        bw2 = lyr["bottle_w"][:, :, 0].astype(jnp.float32)             # (bneck, Cout)
        bb = lyr["bottle_b"].reshape(bneck, 1).astype(jnp.float32)
        if fuse_taps:
            cw2 = jnp.transpose(lyr["conv_w"], (0, 2, 1)) \
                     .reshape(Cout, K * bneck).astype(jnp.float32)     # (Cout, K*bneck)
            cw_spec = pl.BlockSpec((Cout, K * bneck), lambda b: (0, 0))
        else:
            cw2 = jnp.transpose(lyr["conv_w"], (2, 0, 1)).astype(jnp.float32)
            cw_spec = pl.BlockSpec((K, Cout, bneck), lambda b: (0, 0, 0))
        cb = lyr["conv_b"].reshape(Cout, 1).astype(jnp.float32)
        flat_w += [bw2, bb, cw2, cb]
        in_specs += [
            pl.BlockSpec((bneck, Cout), lambda b: (0, 0)),
            pl.BlockSpec((bneck, 1), lambda b: (0, 0)),
            cw_spec,
            pl.BlockSpec((Cout, 1), lambda b: (0, 0)),
        ]

    # ---- explicit VMEM budget (review: re-derive for v7x's 64 MiB) ----------
    weight_bytes = 4 * (K * Cout * Cin + Cout + T
                        + n_layers * (bneck * Cout + bneck
                                      + K * bneck * Cout + Cout))
    io_bytes = 2 * 2 * 4 * Bblk * T * (Cin + Cout)     # double-buffered in/out
    vmem_limit = int(min(100 << 20,
                         max(32 << 20,
                             2 * weight_bytes + io_bytes
                             + Bblk * per_sample_bytes + (4 << 20))))

    kernel = functools.partial(_fused_net_kernel, Bblk=Bblk, T=T, K=K,
                               dil0=dilation, dils=dils, fuse_taps=fuse_taps)

    out = pl.pallas_call(
        kernel,
        out_shape=jax.ShapeDtypeStruct((B_pad, Cout, T), jnp.float32),
        grid=(G,),
        in_specs=in_specs,
        out_specs=pl.BlockSpec((Bblk, Cout, T), lambda b: (b, 0, 0)),
        compiler_params=pltpu.CompilerParams(
            dimension_semantics=("parallel",),
            vmem_limit_bytes=vmem_limit),
    )(x, r_row, w0_3d, b0_col, *flat_w)

    return out[:B] if B_pad > B else out                 # NCW, no transpose


# ----------------------------------------------------------------------------
# Pure-JAX reference (faithful to the PyTorch module) for correctness check.
# ----------------------------------------------------------------------------
def _conv1d_ref(x_nct, w, b, dilation, pad):
    out = lax.conv_general_dilated(
        x_nct, w, window_strides=(1,), padding=[(pad, pad)],
        rhs_dilation=(dilation,), dimension_numbers=("NCH", "OIH", "NCH"))
    return out + b[None, :, None]


def _instnorm_ref(x_nct):
    mean = jnp.mean(x_nct, axis=-1, keepdims=True)
    var = jnp.mean((x_nct - mean) ** 2, axis=-1, keepdims=True)
    return (x_nct - mean) / jnp.sqrt(var + 1e-5)


def ref_forward(params, x_nct, *, dilation=1):
    B, Cin, T = x_nct.shape
    mask = jnp.ones_like(x_nct)
    w0, b0 = params["layer0"]["w"], params["layer0"]["b"]
    Cout, _, K = w0.shape
    pad = (K - 1) // 2 * dilation
    um = lax.conv_general_dilated(
        mask, jnp.ones((Cout, Cin, K), jnp.float32), (1,), [(pad, pad)],
        rhs_dilation=(dilation,), dimension_numbers=("NCH", "OIH", "NCH"))
    ratio = (Cin * K) / (um + 1e-8)
    umc = jnp.clip(um, 0.0, 1.0)
    ratio = ratio * umc
    raw = _conv1d_ref(x_nct * mask, w0, b0, dilation, pad)
    out = ((raw - b0[None, :, None]) * ratio + b0[None, :, None]) * umc
    h = _instnorm_ref(_gelu(out))
    for i, lyr in enumerate(params["layers"]):
        di = dilation * (2 ** i)
        z = _conv1d_ref(h, lyr["bottle_w"], lyr["bottle_b"], 1, 0)
        y = _conv1d_ref(z, lyr["conv_w"], lyr["conv_b"], di, (K - 1) // 2 * di)
        h = _instnorm_ref(_gelu(y + h))
    return h


# ----------------------------------------------------------------------------
# Deterministic parameter init (shapes follow the module's __init__)
# ----------------------------------------------------------------------------
def init_params(key, in_channel, out_channel, bottleneck, kernel_size,
                double_receptivefield):
    keys = jax.random.split(key, 2 + 4 * double_receptivefield)
    ki = iter(keys)
    params = {
        "layer0": {
            "w": jax.random.normal(next(ki),
                                   (out_channel, in_channel, kernel_size),
                                   jnp.float32) * 0.1,
            "b": jax.random.normal(next(ki), (out_channel,),
                                   jnp.float32) * 0.1,
        },
        "layers": [],
    }
    for _ in range(double_receptivefield):
        params["layers"].append({
            "bottle_w": jax.random.normal(next(ki),
                                          (bottleneck, out_channel, 1),
                                          jnp.float32) * 0.1,
            "bottle_b": jax.random.normal(next(ki), (bottleneck,),
                                          jnp.float32) * 0.1,
            "conv_w": jax.random.normal(next(ki),
                                        (out_channel, bottleneck, kernel_size),
                                        jnp.float32) * 0.1,
            "conv_b": jax.random.normal(next(ki), (out_channel,),
                                        jnp.float32) * 0.1,
        })
    return params


if __name__ == "__main__":
    # Small, module-consistent shapes: 3-channel 1D signal, length 64.
    B, Cin, T = 2, 3, 64
    Cout, bottleneck, K, drf = 32, 8, 5, 2   # double_receptivefield=2 -> dil 1,2

    key = jax.random.PRNGKey(0)
    pkey, xkey = jax.random.split(key)
    params = init_params(pkey, Cin, Cout, bottleneck, K, drf)
    x = jax.random.normal(xkey, (B, Cin, T), jnp.float32)

    fwd = jax.jit(lambda p, xx: dilated_conv_net_forward(p, xx, dilation=1))
    out = jax.block_until_ready(fwd(params, x))
    assert out.shape == (B, Cout, T), out.shape

    ref = jax.block_until_ready(ref_forward(params, x, dilation=1))
    np.testing.assert_allclose(np.asarray(out), np.asarray(ref),
                               rtol=2e-3, atol=2e-3)
    print("KERNEL_OK")
</pallas_src>

<mosaic_0001>
module attributes {stable_mosaic.version = 11 : i64} {
  func.func @_fused_net_kernel(%arg0: i32, %arg1: memref<1x3x64xf32, #tpu.memory_space<vmem>>, %arg2: memref<1x64xf32, #tpu.memory_space<vmem>>, %arg3: memref<5x32x3xf32, #tpu.memory_space<vmem>>, %arg4: memref<32x1xf32, #tpu.memory_space<vmem>>, %arg5: memref<8x32xf32, #tpu.memory_space<vmem>>, %arg6: memref<8x1xf32, #tpu.memory_space<vmem>>, %arg7: memref<32x40xf32, #tpu.memory_space<vmem>>, %arg8: memref<32x1xf32, #tpu.memory_space<vmem>>, %arg9: memref<8x32xf32, #tpu.memory_space<vmem>>, %arg10: memref<8x1xf32, #tpu.memory_space<vmem>>, %arg11: memref<32x40xf32, #tpu.memory_space<vmem>>, %arg12: memref<32x1xf32, #tpu.memory_space<vmem>>, %arg13: memref<1x32x64xf32, #tpu.memory_space<vmem>>) attributes {dimension_semantics = [#tpu.dimension_semantics<parallel>], iteration_bounds = array<i64: 2>, scalar_prefetch = 0 : i64, scratch_operands = 0 : i64, tpu.core_type = #tpu.core_type<tc>, window_params = [{transform_indices = @transform_0, window_bounds = array<i64: 1, 3, 64>}, {pipeline_mode = #tpu.pipeline_mode<synchronous>, transform_indices = @transform_1, window_bounds = array<i64: 1, 64>}, {pipeline_mode = #tpu.pipeline_mode<synchronous>, transform_indices = @transform_2, window_bounds = array<i64: 5, 32, 3>}, {pipeline_mode = #tpu.pipeline_mode<synchronous>, transform_indices = @transform_3, window_bounds = array<i64: 32, 1>}, {pipeline_mode = #tpu.pipeline_mode<synchronous>, transform_indices = @transform_4, window_bounds = array<i64: 8, 32>}, {pipeline_mode = #tpu.pipeline_mode<synchronous>, transform_indices = @transform_5, window_bounds = array<i64: 8, 1>}, {pipeline_mode = #tpu.pipeline_mode<synchronous>, transform_indices = @transform_6, window_bounds = array<i64: 32, 40>}, {pipeline_mode = #tpu.pipeline_mode<synchronous>, transform_indices = @transform_7, window_bounds = array<i64: 32, 1>}, {pipeline_mode = #tpu.pipeline_mode<synchronous>, transform_indices = @transform_8, window_bounds = array<i64: 8, 32>}, {pipeline_mode = #tpu.pipeline_mode<synchronous>, transform_indices = @transform_9, window_bounds = array<i64: 8, 1>}, {pipeline_mode = #tpu.pipeline_mode<synchronous>, transform_indices = @transform_10, window_bounds = array<i64: 32, 40>}, {pipeline_mode = #tpu.pipeline_mode<synchronous>, transform_indices = @transform_11, window_bounds = array<i64: 32, 1>}, {transform_indices = @transform_12, window_bounds = array<i64: 1, 32, 64>}]} {
    %c0 = arith.constant 0 : index
    %c0_0 = arith.constant 0 : index
    %0 = vector.load %arg2[%c0, %c0_0] : memref<1x64xf32, #tpu.memory_space<vmem>>, vector<1x64xf32>
    %c0_1 = arith.constant 0 : index
    %c0_2 = arith.constant 0 : index
    %1 = vector.load %arg4[%c0_1, %c0_2] : memref<32x1xf32, #tpu.memory_space<vmem>>, vector<32x1xf32>
    %c0_3 = arith.constant 0 : index
    %c0_4 = arith.constant 0 : index
    %c0_5 = arith.constant 0 : index
    %2 = vector.load %arg3[%c0_3, %c0_4, %c0_5] : memref<5x32x3xf32, #tpu.memory_space<vmem>>, vector<5x32x3xf32>
    %c0_6 = arith.constant 0 : index
    %c0_7 = arith.constant 0 : index
    %3 = vector.load %arg5[%c0_6, %c0_7] : memref<8x32xf32, #tpu.memory_space<vmem>>, vector<8x32xf32>
    %c0_8 = arith.constant 0 : index
    %c0_9 = arith.constant 0 : index
    %4 = vector.load %arg6[%c0_8, %c0_9] : memref<8x1xf32, #tpu.memory_space<vmem>>, vector<8x1xf32>
    %c0_10 = arith.constant 0 : index
    %c0_11 = arith.constant 0 : index
    %5 = vector.load %arg7[%c0_10, %c0_11] : memref<32x40xf32, #tpu.memory_space<vmem>>, vector<32x40xf32>
    %c0_12 = arith.constant 0 : index
    %c0_13 = arith.constant 0 : index
    %6 = vector.load %arg8[%c0_12, %c0_13] : memref<32x1xf32, #tpu.memory_space<vmem>>, vector<32x1xf32>
    %c0_14 = arith.constant 0 : index
    %c0_15 = arith.constant 0 : index
    %7 = vector.load %arg9[%c0_14, %c0_15] : memref<8x32xf32, #tpu.memory_space<vmem>>, vector<8x32xf32>
    %c0_16 = arith.constant 0 : index
    %c0_17 = arith.constant 0 : index
    %8 = vector.load %arg10[%c0_16, %c0_17] : memref<8x1xf32, #tpu.memory_space<vmem>>, vector<8x1xf32>
    %c0_18 = arith.constant 0 : index
    %c0_19 = arith.constant 0 : index
    %9 = vector.load %arg11[%c0_18, %c0_19] : memref<32x40xf32, #tpu.memory_space<vmem>>, vector<32x40xf32>
    %c0_20 = arith.constant 0 : index
    %c0_21 = arith.constant 0 : index
    %10 = vector.load %arg12[%c0_20, %c0_21] : memref<32x1xf32, #tpu.memory_space<vmem>>, vector<32x1xf32>
    %c0_22 = arith.constant 0 : index
    %c0_23 = arith.constant 0 : index
    %c0_24 = arith.constant 0 : index
    %11 = vector.load %arg1[%c0_22, %c0_23, %c0_24] : memref<1x3x64xf32, #tpu.memory_space<vmem>>, vector<1x3x64xf32>
    %12 = vector.shape_cast %11 : vector<1x3x64xf32> to vector<3x64xf32>
    %13 = vector.extract_strided_slice %2 {offsets = [0, 0, 0], sizes = [1, 32, 3], strides = [1, 1, 1]} : vector<5x32x3xf32> to vector<1x32x3xf32>
    %14 = vector.shape_cast %13 : vector<1x32x3xf32> to vector<32x3xf32>
    %cst = arith.constant 0.000000e+00 : f32
    %15 = vector.broadcast %cst : f32 to vector<3x2xf32>
    %16 = vector.extract_strided_slice %12 {offsets = [0, 0], sizes = [3, 62], strides = [1, 1]} : vector<3x64xf32> to vector<3x62xf32>
    %17 = tpu.concatenate %15, %16 in 1 : vector<3x2xf32>, vector<3x62xf32> -> vector<3x64xf32>
    %cst_25 = arith.constant dense<0.000000e+00> : vector<32x64xf32>
    %18 = tpu.matmul %14, %17, %cst_25 {dimension_numbers = #tpu.dot_dimension_numbers<[1], [0], [0], [1], [0, 0, 1, 1], [], []>} : vector<32x3xf32>, vector<3x64xf32>, vector<32x64xf32> -> vector<32x64xf32>
    %19 = vector.extract_strided_slice %2 {offsets = [1, 0, 0], sizes = [1, 32, 3], strides = [1, 1, 1]} : vector<5x32x3xf32> to vector<1x32x3xf32>
    %20 = vector.shape_cast %19 : vector<1x32x3xf32> to vector<32x3xf32>
    %cst_26 = arith.constant 0.000000e+00 : f32
    %21 = vector.broadcast %cst_26 : f32 to vector<3x1xf32>
    %22 = vector.extract_strided_slice %12 {offsets = [0, 0], sizes = [3, 63], strides = [1, 1]} : vector<3x64xf32> to vector<3x63xf32>
    %23 = tpu.concatenate %21, %22 in 1 : vector<3x1xf32>, vector<3x63xf32> -> vector<3x64xf32>
    %cst_27 = arith.constant dense<0.000000e+00> : vector<32x64xf32>
    %24 = tpu.matmul %20, %23, %cst_27 {dimension_numbers = #tpu.dot_dimension_numbers<[1], [0], [0], [1], [0, 0, 1, 1], [], []>} : vector<32x3xf32>, vector<3x64xf32>, vector<32x64xf32> -> vector<32x64xf32>
    %25 = arith.addf %18, %24 : vector<32x64xf32>
    %26 = vector.extract_strided_slice %2 {offsets = [2, 0, 0], sizes = [1, 32, 3], strides = [1, 1, 1]} : vector<5x32x3xf32> to vector<1x32x3xf32>
    %27 = vector.shape_cast %26 : vector<1x32x3xf32> to vector<32x3xf32>
    %cst_28 = arith.constant dense<0.000000e+00> : vector<32x64xf32>
    %28 = tpu.matmul %27, %12, %cst_28 {dimension_numbers = #tpu.dot_dimension_numbers<[1], [0], [0], [1], [0, 0, 1, 1], [], []>} : vector<32x3xf32>, vector<3x64xf32>, vector<32x64xf32> -> vector<32x64xf32>
    %29 = arith.addf %25, %28 : vector<32x64xf32>
    %30 = vector.extract_strided_slice %2 {offsets = [3, 0, 0], sizes = [1, 32, 3], strides = [1, 1, 1]} : vector<5x32x3xf32> to vector<1x32x3xf32>
    %31 = vector.shape_cast %30 : vector<1x32x3xf32> to vector<32x3xf32>
    %cst_29 = arith.constant 0.000000e+00 : f32
    %32 = vector.broadcast %cst_29 : f32 to vector<3x1xf32>
    %33 = vector.extract_strided_slice %12 {offsets = [0, 1], sizes = [3, 63], strides = [1, 1]} : vector<3x64xf32> to vector<3x63xf32>
    %34 = tpu.concatenate %33, %32 in 1 : vector<3x63xf32>, vector<3x1xf32> -> vector<3x64xf32>
    %cst_30 = arith.constant dense<0.000000e+00> : vector<32x64xf32>
    %35 = tpu.matmul %31, %34, %cst_30 {dimension_numbers = #tpu.dot_dimension_numbers<[1], [0], [0], [1], [0, 0, 1, 1], [], []>} : vector<32x3xf32>, vector<3x64xf32>, vector<32x64xf32> -> vector<32x64xf32>
    %36 = arith.addf %29, %35 : vector<32x64xf32>
    %37 = vector.extract_strided_slice %2 {offsets = [4, 0, 0], sizes = [1, 32, 3], strides = [1, 1, 1]} : vector<5x32x3xf32> to vector<1x32x3xf32>
    %38 = vector.shape_cast %37 : vector<1x32x3xf32> to vector<32x3xf32>
    %cst_31 = arith.constant 0.000000e+00 : f32
    %39 = vector.broadcast %cst_31 : f32 to vector<3x2xf32>
    %40 = vector.extract_strided_slice %12 {offsets = [0, 2], sizes = [3, 62], strides = [1, 1]} : vector<3x64xf32> to vector<3x62xf32>
    %41 = tpu.concatenate %40, %39 in 1 : vector<3x62xf32>, vector<3x2xf32> -> vector<3x64xf32>
    %cst_32 = arith.constant dense<0.000000e+00> : vector<32x64xf32>
    %42 = tpu.matmul %38, %41, %cst_32 {dimension_numbers = #tpu.dot_dimension_numbers<[1], [0], [0], [1], [0, 0, 1, 1], [], []>} : vector<32x3xf32>, vector<3x64xf32>, vector<32x64xf32> -> vector<32x64xf32>
    %43 = arith.addf %36, %42 : vector<32x64xf32>
    %44 = vector.broadcast %0 : vector<1x64xf32> to vector<32x64xf32>
    %45 = arith.mulf %43, %44 : vector<32x64xf32>
    %46 = vector.broadcast %1 : vector<32x1xf32> to vector<32x64xf32>
    %47 = arith.addf %45, %46 : vector<32x64xf32>
    %cst_33 = arith.constant 5.000000e-01 : f32
    %48 = vector.broadcast %cst_33 : f32 to vector<32x64xf32>
    %49 = arith.mulf %48, %47 : vector<32x64xf32>
    %cst_34 = arith.constant 0.707106769 : f32
    %50 = vector.broadcast %cst_34 : f32 to vector<32x64xf32>
    %51 = arith.mulf %47, %50 : vector<32x64xf32>
    %52 = math.erf %51 : vector<32x64xf32>
    %cst_35 = arith.constant 1.000000e+00 : f32
    %53 = vector.broadcast %cst_35 : f32 to vector<32x64xf32>
    %54 = arith.addf %53, %52 : vector<32x64xf32>
    %55 = arith.mulf %49, %54 : vector<32x64xf32>
    %cst_36 = arith.constant dense<0.000000e+00> : vector<32xf32>
    %56 = vector.multi_reduction <add>, %55, %cst_36 [1] : vector<32x64xf32> to vector<32xf32>
    %57 = vector.shape_cast %56 : vector<32xf32> to vector<32x1xf32>
    %cst_37 = arith.constant 6.400000e+01 : f32
    %58 = vector.broadcast %cst_37 : f32 to vector<32x1xf32>
    %59 = arith.divf %57, %58 : vector<32x1xf32>
    %60 = vector.broadcast %59 : vector<32x1xf32> to vector<32x64xf32>
    %61 = arith.subf %55, %60 : vector<32x64xf32>
    %62 = arith.mulf %61, %61 : vector<32x64xf32>
    %cst_38 = arith.constant dense<0.000000e+00> : vector<32xf32>
    %63 = vector.multi_reduction <add>, %62, %cst_38 [1] : vector<32x64xf32> to vector<32xf32>
    %64 = vector.shape_cast %63 : vector<32xf32> to vector<32x1xf32>
    %cst_39 = arith.constant 6.400000e+01 : f32
    %65 = vector.broadcast %cst_39 : f32 to vector<32x1xf32>
    %66 = arith.divf %64, %65 : vector<32x1xf32>
    %cst_40 = arith.constant 9.99999974E-6 : f32
    %67 = vector.broadcast %cst_40 : f32 to vector<32x1xf32>
    %68 = arith.addf %66, %67 : vector<32x1xf32>
    %69 = math.rsqrt %68 : vector<32x1xf32>
    %70 = vector.broadcast %69 : vector<32x1xf32> to vector<32x64xf32>
    %71 = arith.mulf %61, %70 : vector<32x64xf32>
    %cst_41 = arith.constant dense<0.000000e+00> : vector<8x64xf32>
    %72 = tpu.matmul %3, %71, %cst_41 {dimension_numbers = #tpu.dot_dimension_numbers<[1], [0], [0], [1], [0, 0, 1, 1], [], []>} : vector<8x32xf32>, vector<32x64xf32>, vector<8x64xf32> -> vector<8x64xf32>
    %73 = vector.broadcast %4 : vector<8x1xf32> to vector<8x64xf32>
    %74 = arith.addf %72, %73 : vector<8x64xf32>
    %cst_42 = arith.constant 0.000000e+00 : f32
    %75 = vector.broadcast %cst_42 : f32 to vector<8x2xf32>
    %76 = vector.extract_strided_slice %74 {offsets = [0, 0], sizes = [8, 62], strides = [1, 1]} : vector<8x64xf32> to vector<8x62xf32>
    %77 = tpu.concatenate %75, %76 in 1 : vector<8x2xf32>, vector<8x62xf32> -> vector<8x64xf32>
    %cst_43 = arith.constant 0.000000e+00 : f32
    %78 = vector.broadcast %cst_43 : f32 to vector<8x1xf32>
    %79 = vector.extract_strided_slice %74 {offsets = [0, 0], sizes = [8, 63], strides = [1, 1]} : vector<8x64xf32> to vector<8x63xf32>
    %80 = tpu.concatenate %78, %79 in 1 : vector<8x1xf32>, vector<8x63xf32> -> vector<8x64xf32>
    %cst_44 = arith.constant 0.000000e+00 : f32
    %81 = vector.broadcast %cst_44 : f32 to vector<8x1xf32>
    %82 = vector.extract_strided_slice %74 {offsets = [0, 1], sizes = [8, 63], strides = [1, 1]} : vector<8x64xf32> to vector<8x63xf32>
    %83 = tpu.concatenate %82, %81 in 1 : vector<8x63xf32>, vector<8x1xf32> -> vector<8x64xf32>
    %cst_45 = arith.constant 0.000000e+00 : f32
    %84 = vector.broadcast %cst_45 : f32 to vector<8x2xf32>
    %85 = vector.extract_strided_slice %74 {offsets = [0, 2], sizes = [8, 62], strides = [1, 1]} : vector<8x64xf32> to vector<8x62xf32>
    %86 = tpu.concatenate %85, %84 in 1 : vector<8x62xf32>, vector<8x2xf32> -> vector<8x64xf32>
    %87 = tpu.concatenate %77, %80, %74, %83, %86 in 0 : vector<8x64xf32>, vector<8x64xf32>, vector<8x64xf32>, vector<8x64xf32>, vector<8x64xf32> -> vector<40x64xf32>
    %cst_46 = arith.constant dense<0.000000e+00> : vector<32x64xf32>
    %88 = tpu.matmul %5, %87, %cst_46 {dimension_numbers = #tpu.dot_dimension_numbers<[1], [0], [0], [1], [0, 0, 1, 1], [], []>} : vector<32x40xf32>, vector<40x64xf32>, vector<32x64xf32> -> vector<32x64xf32>
    %89 = vector.broadcast %6 : vector<32x1xf32> to vector<32x64xf32>
    %90 = arith.addf %88, %89 : vector<32x64xf32>
    %91 = arith.addf %90, %71 : vector<32x64xf32>
    %cst_47 = arith.constant 5.000000e-01 : f32
    %92 = vector.broadcast %cst_47 : f32 to vector<32x64xf32>
    %93 = arith.mulf %92, %91 : vector<32x64xf32>
    %cst_48 = arith.constant 0.707106769 : f32
    %94 = vector.broadcast %cst_48 : f32 to vector<32x64xf32>
    %95 = arith.mulf %91, %94 : vector<32x64xf32>
    %96 = math.erf %95 : vector<32x64xf32>
    %cst_49 = arith.constant 1.000000e+00 : f32
    %97 = vector.broadcast %cst_49 : f32 to vector<32x64xf32>
    %98 = arith.addf %97, %96 : vector<32x64xf32>
    %99 = arith.mulf %93, %98 : vector<32x64xf32>
    %cst_50 = arith.constant dense<0.000000e+00> : vector<32xf32>
    %100 = vector.multi_reduction <add>, %99, %cst_50 [1] : vector<32x64xf32> to vector<32xf32>
    %101 = vector.shape_cast %100 : vector<32xf32> to vector<32x1xf32>
    %cst_51 = arith.constant 6.400000e+01 : f32
    %102 = vector.broadcast %cst_51 : f32 to vector<32x1xf32>
    %103 = arith.divf %101, %102 : vector<32x1xf32>
    %104 = vector.broadcast %103 : vector<32x1xf32> to vector<32x64xf32>
    %105 = arith.subf %99, %104 : vector<32x64xf32>
    %106 = arith.mulf %105, %105 : vector<32x64xf32>
    %cst_52 = arith.constant dense<0.000000e+00> : vector<32xf32>
    %107 = vector.multi_reduction <add>, %106, %cst_52 [1] : vector<32x64xf32> to vector<32xf32>
    %108 = vector.shape_cast %107 : vector<32xf32> to vector<32x1xf32>
    %cst_53 = arith.constant 6.400000e+01 : f32
    %109 = vector.broadcast %cst_53 : f32 to vector<32x1xf32>
    %110 = arith.divf %108, %109 : vector<32x1xf32>
    %cst_54 = arith.constant 9.99999974E-6 : f32
    %111 = vector.broadcast %cst_54 : f32 to vector<32x1xf32>
    %112 = arith.addf %110, %111 : vector<32x1xf32>
    %113 = math.rsqrt %112 : vector<32x1xf32>
    %114 = vector.broadcast %113 : vector<32x1xf32> to vector<32x64xf32>
    %115 = arith.mulf %105, %114 : vector<32x64xf32>
    %cst_55 = arith.constant dense<0.000000e+00> : vector<8x64xf32>
    %116 = tpu.matmul %7, %115, %cst_55 {dimension_numbers = #tpu.dot_dimension_numbers<[1], [0], [0], [1], [0, 0, 1, 1], [], []>} : vector<8x32xf32>, vector<32x64xf32>, vector<8x64xf32> -> vector<8x64xf32>
    %117 = vector.broadcast %8 : vector<8x1xf32> to vector<8x64xf32>
    %118 = arith.addf %116, %117 : vector<8x64xf32>
    %cst_56 = arith.constant 0.000000e+00 : f32
    %119 = vector.broadcast %cst_56 : f32 to vector<8x4xf32>
    %120 = vector.extract_strided_slice %118 {offsets = [0, 0], sizes = [8, 60], strides = [1, 1]} : vector<8x64xf32> to vector<8x60xf32>
    %121 = tpu.concatenate %119, %120 in 1 : vector<8x4xf32>, vector<8x60xf32> -> vector<8x64xf32>
    %cst_57 = arith.constant 0.000000e+00 : f32
    %122 = vector.broadcast %cst_57 : f32 to vector<8x2xf32>
    %123 = vector.extract_strided_slice %118 {offsets = [0, 0], sizes = [8, 62], strides = [1, 1]} : vector<8x64xf32> to vector<8x62xf32>
    %124 = tpu.concatenate %122, %123 in 1 : vector<8x2xf32>, vector<8x62xf32> -> vector<8x64xf32>
    %cst_58 = arith.constant 0.000000e+00 : f32
    %125 = vector.broadcast %cst_58 : f32 to vector<8x2xf32>
    %126 = vector.extract_strided_slice %118 {offsets = [0, 2], sizes = [8, 62], strides = [1, 1]} : vector<8x64xf32> to vector<8x62xf32>
    %127 = tpu.concatenate %126, %125 in 1 : vector<8x62xf32>, vector<8x2xf32> -> vector<8x64xf32>
    %cst_59 = arith.constant 0.000000e+00 : f32
    %128 = vector.broadcast %cst_59 : f32 to vector<8x4xf32>
    %129 = vector.extract_strided_slice %118 {offsets = [0, 4], sizes = [8, 60], strides = [1, 1]} : vector<8x64xf32> to vector<8x60xf32>
    %130 = tpu.concatenate %129, %128 in 1 : vector<8x60xf32>, vector<8x4xf32> -> vector<8x64xf32>
    %131 = tpu.concatenate %121, %124, %118, %127, %130 in 0 : vector<8x64xf32>, vector<8x64xf32>, vector<8x64xf32>, vector<8x64xf32>, vector<8x64xf32> -> vector<40x64xf32>
    %cst_60 = arith.constant dense<0.000000e+00> : vector<32x64xf32>
    %132 = tpu.matmul %9, %131, %cst_60 {dimension_numbers = #tpu.dot_dimension_numbers<[1], [0], [0], [1], [0, 0, 1, 1], [], []>} : vector<32x40xf32>, vector<40x64xf32>, vector<32x64xf32> -> vector<32x64xf32>
    %133 = vector.broadcast %10 : vector<32x1xf32> to vector<32x64xf32>
    %134 = arith.addf %132, %133 : vector<32x64xf32>
    %135 = arith.addf %134, %115 : vector<32x64xf32>
    %cst_61 = arith.constant 5.000000e-01 : f32
    %136 = vector.broadcast %cst_61 : f32 to vector<32x64xf32>
    %137 = arith.mulf %136, %135 : vector<32x64xf32>
    %cst_62 = arith.constant 0.707106769 : f32
    %138 = vector.broadcast %cst_62 : f32 to vector<32x64xf32>
    %139 = arith.mulf %135, %138 : vector<32x64xf32>
    %140 = math.erf %139 : vector<32x64xf32>
    %cst_63 = arith.constant 1.000000e+00 : f32
    %141 = vector.broadcast %cst_63 : f32 to vector<32x64xf32>
    %142 = arith.addf %141, %140 : vector<32x64xf32>
    %143 = arith.mulf %137, %142 : vector<32x64xf32>
    %cst_64 = arith.constant dense<0.000000e+00> : vector<32xf32>
    %144 = vector.multi_reduction <add>, %143, %cst_64 [1] : vector<32x64xf32> to vector<32xf32>
    %145 = vector.shape_cast %144 : vector<32xf32> to vector<32x1xf32>
    %cst_65 = arith.constant 6.400000e+01 : f32
    %146 = vector.broadcast %cst_65 : f32 to vector<32x1xf32>
    %147 = arith.divf %145, %146 : vector<32x1xf32>
    %148 = vector.broadcast %147 : vector<32x1xf32> to vector<32x64xf32>
    %149 = arith.subf %143, %148 : vector<32x64xf32>
    %150 = arith.mulf %149, %149 : vector<32x64xf32>
    %cst_66 = arith.constant dense<0.000000e+00> : vector<32xf32>
    %151 = vector.multi_reduction <add>, %150, %cst_66 [1] : vector<32x64xf32> to vector<32xf32>
    %152 = vector.shape_cast %151 : vector<32xf32> to vector<32x1xf32>
    %cst_67 = arith.constant 6.400000e+01 : f32
    %153 = vector.broadcast %cst_67 : f32 to vector<32x1xf32>
    %154 = arith.divf %152, %153 : vector<32x1xf32>
    %cst_68 = arith.constant 9.99999974E-6 : f32
    %155 = vector.broadcast %cst_68 : f32 to vector<32x1xf32>
    %156 = arith.addf %154, %155 : vector<32x1xf32>
    %157 = math.rsqrt %156 : vector<32x1xf32>
    %158 = vector.broadcast %157 : vector<32x1xf32> to vector<32x64xf32>
    %159 = arith.mulf %149, %158 : vector<32x64xf32>
    %c0_69 = arith.constant 0 : index
    %c0_70 = arith.constant 0 : index
    %c0_71 = arith.constant 0 : index
    %160 = vector.load %arg13[%c0_69, %c0_70, %c0_71] : memref<1x32x64xf32, #tpu.memory_space<vmem>>, vector<1x32x64xf32>
    %161 = vector.shape_cast %160 : vector<1x32x64xf32> to vector<32x64xf32>
    %162 = vector.shape_cast %159 : vector<32x64xf32> to vector<1x32x64xf32>
    tpu.vector_store %arg13[%c0_69, %c0_70, %c0_71], %162 {strides = array<i32>} : memref<1x32x64xf32, #tpu.memory_space<vmem>>, vector<1x32x64xf32>,
    return
  }
  func.func @transform_0(%arg0: i32) -> (i32, i32, i32) {
    %c0_i32 = arith.constant 0 : i32
    %c0_i32_0 = arith.constant 0 : i32
    %c0_i32_1 = arith.constant 0 : i32
    return %arg0, %c0_i32, %c0_i32_0 : i32, i32, i32
  }
  func.func @transform_1(%arg0: i32) -> (i32, i32) {
    %c0_i32 = arith.constant 0 : i32
    %c0_i32_0 = arith.constant 0 : i32
    %c0_i32_1 = arith.constant 0 : i32
    return %c0_i32, %c0_i32_0 : i32, i32
  }
  func.func @transform_2(%arg0: i32) -> (i32, i32, i32) {
    %c0_i32 = arith.constant 0 : i32
    %c0_i32_0 = arith.constant 0 : i32
    %c0_i32_1 = arith.constant 0 : i32
    %c0_i32_2 = arith.constant 0 : i32
    return %c0_i32, %c0_i32_0, %c0_i32_1 : i32, i32, i32
  }
  func.func @transform_3(%arg0: i32) -> (i32, i32) {
    %c0_i32 = arith.constant 0 : i32
    %c0_i32_0 = arith.constant 0 : i32
    %c0_i32_1 = arith.constant 0 : i32
    return %c0_i32, %c0_i32_0 : i32, i32
  }
  func.func @transform_4(%arg0: i32) -> (i32, i32) {
    %c0_i32 = arith.constant 0 : i32
    %c0_i32_0 = arith.constant 0 : i32
    %c0_i32_1 = arith.constant 0 : i32
    return %c0_i32, %c0_i32_0 : i32, i32
  }
  func.func @transform_5(%arg0: i32) -> (i32, i32) {
    %c0_i32 = arith.constant 0 : i32
    %c0_i32_0 = arith.constant 0 : i32
    %c0_i32_1 = arith.constant 0 : i32
    return %c0_i32, %c0_i32_0 : i32, i32
  }
  func.func @transform_6(%arg0: i32) -> (i32, i32) {
    %c0_i32 = arith.constant 0 : i32
    %c0_i32_0 = arith.constant 0 : i32
    %c0_i32_1 = arith.constant 0 : i32
    return %c0_i32, %c0_i32_0 : i32, i32
  }
  func.func @transform_7(%arg0: i32) -> (i32, i32) {
    %c0_i32 = arith.constant 0 : i32
    %c0_i32_0 = arith.constant 0 : i32
    %c0_i32_1 = arith.constant 0 : i32
    return %c0_i32, %c0_i32_0 : i32, i32
  }
  func.func @transform_8(%arg0: i32) -> (i32, i32) {
    %c0_i32 = arith.constant 0 : i32
    %c0_i32_0 = arith.constant 0 : i32
    %c0_i32_1 = arith.constant 0 : i32
    return %c0_i32, %c0_i32_0 : i32, i32
  }
  func.func @transform_9(%arg0: i32) -> (i32, i32) {
    %c0_i32 = arith.constant 0 : i32
    %c0_i32_0 = arith.constant 0 : i32
    %c0_i32_1 = arith.constant 0 : i32
    return %c0_i32, %c0_i32_0 : i32, i32
  }
  func.func @transform_10(%arg0: i32) -> (i32, i32) {
    %c0_i32 = arith.constant 0 : i32
    %c0_i32_0 = arith.constant 0 : i32
    %c0_i32_1 = arith.constant 0 : i32
    return %c0_i32, %c0_i32_0 : i32, i32
  }
  func.func @transform_11(%arg0: i32) -> (i32, i32) {
    %c0_i32 = arith.constant 0 : i32
    %c0_i32_0 = arith.constant 0 : i32
    %c0_i32_1 = arith.constant 0 : i32
    return %c0_i32, %c0_i32_0 : i32, i32
  }
  func.func @transform_12(%arg0: i32) -> (i32, i32, i32) {
    %c0_i32 = arith.constant 0 : i32
    %c0_i32_0 = arith.constant 0 : i32
    %c0_i32_1 = arith.constant 0 : i32
    return %arg0, %c0_i32, %c0_i32_0 : i32, i32, i32
  }
}

</mosaic_0001>

<bundles_post_ra>
// kernel: _lambda_.1
= control target key start
LH: loop header
LB: loop body
LE: loop exit
PB: predicated region body
PF: predicated region fallthrough
CT: control target
= control target key end

     0   :  { %17 = vsyncpa [#allocation3], 0  ;;  %s2633_s0 = inlined_call_operand.vmem [shape: f32[2,3,64], index: 0, kind: input, shape index: {}]   ;;  %s2634_s1 = inlined_call_operand.vmem [shape: f32[1,64], index: 1, kind: input, shape index: {}]   ;;  %s2635_s2 = inlined_call_operand.vmem [shape: f32[5,32,3], index: 2, kind: input, shape index: {}]   ;;  %s2636_s3 = inlined_call_operand.vmem [shape: f32[32,1], index: 3, kind: input, shape index: {}]   ;;  %s2637_s4 = inlined_call_operand.vmem [shape: f32[8,32], index: 4, kind: input, shape index: {}]   ;;  %s2638_s5 = inlined_call_operand.vmem [shape: f32[8,1], index: 5, kind: input, shape index: {}]   ;;  %s2639_s6 = inlined_call_operand.vmem [shape: f32[32,40], index: 6, kind: input, shape index: {}]   ;;  %s2640_s7 = inlined_call_operand.vmem [shape: f32[32,1], index: 7, kind: input, shape index: {}]   ;;  %s2641_s8 = inlined_call_operand.vmem [shape: f32[8,32], index: 8, kind: input, shape index: {}]   ;;  %s2642_s9 = inlined_call_operand.vmem [shape: f32[8,1], index: 9, kind: input, shape index: {}]   ;;  %s2643_s10 = inlined_call_operand.vmem [shape: f32[32,40], index: 10, kind: input, shape index: {}]   ;;  %s2644_s11 = inlined_call_operand.vmem [shape: f32[32,1], index: 11, kind: input, shape index: {}]   ;;  %s2645_s12 = inlined_call_operand.hbm [shape: f32[2,32,64], index: 12, kind: output, shape index: {}]  }
   0x1   :  { %19 = vsyncpa [#allocation3 + $0x1], 0  ;;  %s2261_s21 = smov 0   ;;  %s2263_s22 = smov 0  }
   0x2   :  { %s2265_s23 = smov 0   ;;  %s2267_s24 = smov 0  }
   0x3 LB: > { %2648 = sst [smem:[#allocation5_spill]] %s2176_s23  ;;  %s2282_s25 = sadd.s32 4294967295, %s2180_s24   ;;  %s2180_s24 = sphi %s2267_s24, %s2659_s24   ;;  %s2176_s23 = sphi %s2265_s23, %s2656_s23   ;;  %s2172_s22 = sphi %s2263_s22, %s2658_s22   ;;  %s2168_s21 = sphi %s2261_s21, %s2657_s21  }
   0x4   : > { %s1757_s26 = sadd.s32 4294967294, %s2180_s24   ;;  %s2286_s27 = sadd.s32 1, %s2180_s24  }
   0x5   : > { %s289_s28 = sadd.s32 1, %s2176_s23  ;;  %s286_s29 = ssub.s32 %s2180_s24, %s2286_s27 }
   0x6   : > { %p299_p0 = scmp.ne.s32.totalorder %s2176_s23, %s2172_s22  ;;  %p287_p1 = scmp.eq.s32.totalorder %s286_s29, 0 }
   0x7   : > { %p300_p2 = scmp.eq.s32.totalorder %s2282_s25, 1  ;;  %p305_p3 = scmp.ne.s32.totalorder %s2172_s22, %s2168_s21 }
   0x8   : > { %p306_p4 = scmp.eq.s32.totalorder %s1757_s26, 1  ;;  %p1760_p7 = scmp.ge.s32.totalorder %s2180_s24, 1 }
   0x9   : > { %s2297_s30 = scalar_select %p287_p1, %s2176_s23, %s289_s28  }
   0xa   : > { %p2299_p5 = por %p300_p2, %p299_p0  ;;  %p2303_p6 = por %p306_p4, %p305_p3 }
   0xb   : > { %2649 = sst [smem:[#allocation6_spill]] %s2297_s30  ;;  %p364_p8 = scmp.lt.s32.totalorder %s2180_s24, 3 }
   0xd   : > { %p365_p9 = pnand %p1760_p7, %p364_p8 }
   0xe   : > { %p405_p10 = scmp.lt.s32.totalorder (!%p365_p9), %s2282_s25, 1  ;;  %v418_v0 = vld [vmem:[%s2635_s2 + $0x20] sm:$0xff] (!%p365_p9)  ;;  %vm466_vm0 = vcmask (!%p365_p9), 23552   ;;  %s2647_s28 = smov (!%p365_p9), 1   ;;  %v411_v2 = vld [vmem:[%s2636_s3 + $0x8] sm:$0xff] (!%p365_p9)  ;;  %v2186_v4 = vmov (!%p365_p9), 0  }
   0xf   : > { %368 = sbr.rel (%p365_p9) target bundleno = 2535 (0x9e7), region = 68  ;;  %1872 = vmatprep.mubr.msk.f32.mxu0 (!%p365_p9), %vm466_vm0, %v418_v0  ;;  %s2183_s29 = smov (!%p365_p9), 127   ;;  %v410_v3 = vld [vmem:[%s2636_s3] sm:$0xff] (!%p365_p9)  ;;  %2069 = vset.pattern.permute.xlu1 (!%p365_p9), %v2186_v4  ;;  %v412_v5 = vld [vmem:[%s2636_s3 + $0x10] sm:$0xff] (!%p365_p9)  ;;  %v413_v6 = vld [vmem:[%s2636_s3 + $0x18] sm:$0xff] (!%p365_p9)  ;;  %vm464_vm1 = vcmask (!%p365_p9), 7168  }
  0x10   : > { %s2184_s30 = smov (!%p365_p9), 2   ;;  %s2185_s15 = smov (!%p365_p9), 126   ;;  %2068 = vset.pattern.permute.xlu0 (!%p365_p9), %v2186_v4  ;;  %vm479_vm2 = vcmask (!%p365_p9), 1042432   ;;  %v419_v9 = vld [vmem:[%s2635_s2 + $0x28] sm:$0xff] (!%p365_p9)  ;;  %vm459_vm3 = vcmask (!%p365_p9), 15360   ;;  %v420_v10 = vld [vmem:[%s2635_s2 + $0x30] sm:$0xff] (!%p365_p9)  ;;  %vm1792_vm10 = vmneg (!%p365_p9), %vm464_vm1 }
  0x11   : > { %v421_v13 = vld [vmem:[%s2635_s2 + $0x38] sm:$0xff] (!%p365_p9)  ;;  %v414_v14 = vld [vmem:[%s2635_s2] sm:$0xff] (!%p365_p9)  ;;  %vm774_vm4 = vcmask (!%p365_p9), 515072   ;;  %v415_v16 = vld [vmem:[%s2635_s2 + $0x8] sm:$0xff] (!%p365_p9)  ;;  %vm883_vm5 = vcmask (!%p365_p9), 506880   ;;  %vm1043_vm6 = vcmask (!%p365_p9), 523264  }
  0x12   : > { %v416_v17 = vld [vmem:[%s2635_s2 + $0x10] sm:$0xff] (!%p365_p9)  ;;  %v417_v19 = vld [vmem:[%s2635_s2 + $0x18] sm:$0xff] (!%p365_p9)  ;;  %v422_v20 = vld [vmem:[%s2635_s2 + $0x40] sm:$0xff] (!%p365_p9)  ;;  %vm2188_vm7 = vmmov (!%p365_p9), 0   ;;  %vm1102_vm8 = vcmask (!%p365_p9), 261120   ;;  %vm1213_vm9 = vcmask (!%p365_p9), 326656  }
  0x13   : > { %v423_v22 = vld [vmem:[%s2635_s2 + $0x48] sm:$0xff] (!%p365_p9)  ;;  %v424_v23 = vld [vmem:[%s2635_s2 + $0x50] sm:$0xff] (!%p365_p9)  ;;  %v425_v25 = vld [vmem:[%s2635_s2 + $0x58] sm:$0xff] (!%p365_p9)  ;;  %s2652_s23 = smov (!%p365_p9), 1   ;;  %vm2190_vm13 = vmmov (!%p365_p9), 1   ;;  %s2191_s16 = smov (!%p365_p9), 4  }
  0x14   : > { %v426_v26 = vld [vmem:[%s2635_s2 + $0x60] sm:$0xff] (!%p365_p9)  ;;  %v427_v27 = vld [vmem:[%s2635_s2 + $0x68] sm:$0xff] (!%p365_p9)  ;;  %v428_v28 = vld [vmem:[%s2635_s2 + $0x70] sm:$0xff] (!%p365_p9)  ;;  %vm1469_vm15 = vcmask (!%p365_p9), 31744   ;;  %s2193_s19 = smov (!%p365_p9), [#allocation2]  }
  0x15   : > { %v429_v29 = vld [vmem:[%s2635_s2 + $0x78] sm:$0xff] (!%p365_p9)  ;;  %v430_v30 = vld [vmem:[%s2635_s2 + $0x80] sm:$0xff] (!%p365_p9)  ;;  %v431_v31 = vld [vmem:[%s2635_s2 + $0x88] sm:$0xff] (!%p365_p9) }
  0x16   : > { %s406_s17 = scalar_select %p405_p10, %s2282_s25, 1  ;;  %v432_v32 = vld [vmem:[%s2635_s2 + $0x90] sm:$0xff]  ;;  %v433_v33 = vld [vmem:[%s2635_s2 + $0x98] sm:$0xff]  ;;  %v1788_v34 = vld [vmem:[%s2634_s1] ss:$0 sm:$0xff] }
  0x17   : > { %vm2480_vm11 = vmneg %vm459_vm3 }
  0x18   : > { %s1762_s18 = sshll.u32 %s406_s17, 2  ;;  %vm1971_vm12 = vmpackc.low %vm1792_vm10, %vm2480_vm11  ;;  %s2192_s17 = smov 124  }
  0x19   : > { %s408_s26 = scalar_lea.vmem %s2633_s0, %s1762_s18  ;;  %vm1977_vm14 = vmpackc.low %vm774_vm4, %vm2190_vm13  ;;  %s402_s18 = sand.u32 1, %s2172_s22  }
  0x1a   : > { %v454_v1 = vld [vmem:[%s408_s26] sm:$0x7]  ;;  %s1761_s20 = sshll.u32 %s402_s18, 5 }
  0x1b   : > { %461 = vrot.lane.b32.xlu0 %v454_v1, %s2647_s28  ;;  %771 = vrot.lane.b32.xlu1 %v454_v1, %s2183_s29  ;;  %s404_s26 = scalar_lea.vmem [#allocation2], %s1761_s20  ;;  %s2122_s28 = sshll.u32 %s2193_s19, 4  ;;  %s2123_s28 = int_to_ptr.vmem [resolvable:$false] %s2122_s28 }
  0x1c   : > { %s2124_s20 = scalar_lea.vmem %s2123_s28, 1024 }
  0x1f   : > { %456 = vrot.lane.b32.xlu0 %v454_v1, %s2184_s30  ;;  %880 = vrot.lane.b32.xlu1 %v454_v1, %s2185_s15 }
  0x23   : > { %1006 = vperm.xlu1 %2069, %v411_v2   ;;  %1001 = vperm.xlu0 %2068, %v410_v3  }
  0x27   : > { %1011 = vperm.xlu1 %2069, %v412_v5   ;;  %1016 = vperm.xlu0 %2068, %v413_v6  }
  0x8d   : > { %v462_v7 = vpop.permute.xlu0 %461  ;;  %v772_v15 = vpop.permute.xlu1 %771 }
  0x8e   : > { %v465_v8 = vsel %vm464_vm1, 0.0, %v462_v7  ;;  %v775_v18 = vsel %vm774_vm4, %v772_v15, 0.0 }
  0x8f   : > { %1870 = vmatprep.subr.msk.mxu0 %vm479_vm2, %v465_v8 }
  0x90   : > { %1871 = vmatpush3.msk.msra.mxu0 %vm479_vm2, %v465_v8 }
  0x91   : > { %1873 = vmatmul.mubr.msk.f32.vlgmr.msra.gmra.mrb[0].mxu0 %vm466_vm0, %v419_v9  ;;  %v457_v11 = vpop.permute.xlu0 %456  ;;  %v881_v21 = vpop.permute.xlu1 %880 }
  0x92   : > { %v460_v12 = vsel %vm459_vm3, 0.0, %v457_v11  ;;  %1875 = vmatprep.mubr.msk.f32.mxu0 %vm466_vm0, %v420_v10  ;;  %v884_v24 = vsel %vm883_vm5, %v881_v21, 0.0  ;;  %vm1482_vm3 = vcmask 490496  }
  0x93   : > { %1878 = vmatprep.subr.msk.mxu0 %vm479_vm2, %v460_v12 }
  0x94   : > { %1879 = vmatpush3.msk.msra.mxu0 %vm479_vm2, %v460_v12 }
  0x95   : > { %1876 = vmatmul.mubr.msk.f32.gmra.mrb[2].mxu0 %vm466_vm0, %v421_v13  ;;  %1886 = vmatprep.subr.msk.mxu0 %vm479_vm2, %v454_v1 }
  0x96   : > { %1880 = vmatprep.mubr.msk.f32.mxu0 %vm466_vm0, %v414_v14 }
  0x99   : > { %1881 = vmatmul.mubr.msk.f32.vlgmr.msra.gmra.mrb[0].mxu0 %vm466_vm0, %v415_v16 }
  0x9a   : > { %1883 = vmatprep.mubr.msk.f32.mxu0 %vm466_vm0, %v416_v17  ;;  %1887 = vmatpush3.msk.msra.mxu0 %vm479_vm2, %v454_v1 }
  0x9b   : > { %1894 = vmatprep.subr.msk.mxu0 %vm479_vm2, %v775_v18 }
  0x9d   : > { %1884 = vmatmul.mubr.msk.f32.gmra.mrb[2].mxu0 %vm466_vm0, %v417_v19 }
  0x9e   : > { %1888 = vmatprep.mubr.msk.f32.mxu0 %vm466_vm0, %v422_v20 }
  0xa1   : > { %1889 = vmatmul.mubr.msk.f32.vlgmr.msra.gmra.mrb[0].mxu0 %vm466_vm0, %v423_v22 }
  0xa2   : > { %1895 = vmatpush3.msk.msra.mxu0 %vm479_vm2, %v775_v18  ;;  %1891 = vmatprep.mubr.msk.f32.mxu0 %vm466_vm0, %v424_v23  ;;  %v1002_v36 = vpop.permute.xlu0 %1001  ;;  %v1007_v38 = vpop.permute.xlu1 %1006 }
  0xa3   : > { %1902 = vmatprep.subr.msk.mxu0 %vm479_vm2, %v884_v24 }
  0xa5   : > { %1892 = vmatmul.mubr.msk.f32.gmra.mrb[2].mxu0 %vm466_vm0, %v425_v25 }
  0xa6   : > { %1896 = vmatprep.mubr.msk.f32.mxu0 %vm466_vm0, %v426_v26  ;;  %v1017_v49 = vpop.permute.xlu0 %1016  ;;  %v1012_v50 = vpop.permute.xlu1 %1011 }
  0xa9   : > { %1897 = vmatmul.mubr.msk.f32.vlgmr.msra.gmra.mrb[0].mxu0 %vm466_vm0, %v427_v27 }
  0xaa   : > { %1903 = vmatpush3.msk.msra.mxu0 %vm479_vm2, %v884_v24  ;;  %1899 = vmatprep.mubr.msk.f32.mxu0 %vm466_vm0, %v428_v28  ;;  %vm1995_vm2 = vmpackc.low %vm883_vm5, %vm2190_vm13 }
  0xad   : > { %1900 = vmatmul.mubr.msk.f32.gmra.mrb[2].mxu0 %vm466_vm0, %v429_v29 }
  0xae   : > { %1904 = vmatprep.mubr.msk.f32.mxu0 %vm466_vm0, %v430_v30 }
  0xb1   : > { %1905 = vmatmul.mubr.msk.f32.vlgmr.msra.gmra.mrb[0].mxu0 %vm466_vm0, %v431_v31  ;;  %v435_v31 = vld [vmem:[%s2638_s5] sm:$0xff] }
  0xb2   : > { %1907 = vmatprep.mubr.msk.f32.mxu0 %vm466_vm0, %v432_v32  ;;  %v2187_v32 = vmov 0.0|0.0  }
  0xb3   : > { %1964 = vmatprep.subr.bf16.mxu1 %v2187_v32 }
  0xb5   : > { %1908 = vmatmul.mubr.msk.f32.gmra.mrb[2].mxu0 %vm466_vm0, %v433_v33  ;;  %v2189_v33 = vmov 0.0   ;;  %vm1801_vm0 = vmneg %vm1469_vm15 }
  0xb6   : > { %1918 = vmatprep.mubr.msk.f32.mxu1 %vm2188_vm7, %v2189_v33  ;;  %vm1989_vm1 = vmpackc.low %vm2480_vm11, %vm1801_vm0 }
 0x184   : > { %v1906_v35 = vpop.f32.mrb[0].mxu0 }
 0x185   : > { %v996_v37 = vmul.f32 %v1906_v35, %v1788_v34  ;;  %v966_v39 = vpop.f32.mrb[1].mxu0 }
 0x186   : > { %v995_v40 = vmul.f32 %v1788_v34, %v966_v39 }
 0x187   : > { %v1020_v41 = vadd.f32 %v1007_v38, %v996_v37 }
 0x188   : > { %v1019_v42 = vadd.f32 %v1002_v36, %v995_v40  ;;  %v1909_v43 = vpop.f32.mrb[2].mxu0 }
 0x189   : > { %v1028_v44 = vmul.f32 0.70710677, %v1020_v41  ;;  %v998_v45 = vmul.f32 %v1909_v43, %v1788_v34  ;;  %v976_v46 = vpop.f32.mrb[3].mxu0  ;;  %v1024_v57 = vmul.f32 0.5, %v1020_v41 }
 0x18a   : > { %v1027_v47 = vmul.f32 0.70710677, %v1019_v42  ;;  %v997_v48 = vmul.f32 %v1788_v34, %v976_v46  ;;  %v1023_v59 = vmul.f32 0.5, %v1019_v42 }
 0x18b   : > { %2070 = verf.f32 %v1028_v44  ;;  %v1022_v51 = vadd.f32 %v1017_v49, %v998_v45 }
 0x18c   : > { %2072 = verf.f32 %v1027_v47  ;;  %v1021_v52 = vadd.f32 %v1012_v50, %v997_v48 }
 0x18d   : > { %v1030_v53 = vmul.f32 0.70710677, %v1022_v51  ;;  %v1026_v1 = vmul.f32 0.5, %v1022_v51 }
 0x18e   : > { %v1029_v54 = vmul.f32 0.70710677, %v1021_v52  ;;  %v1025_v5 = vmul.f32 0.5, %v1021_v52 }
 0x18f   : > { %2074 = verf.f32 %v1030_v53 }
 0x190   : > { %2076 = verf.f32 %v1029_v54 }
 0x195   : > { %v2071_v55 = vpop.eup %2070 }
 0x196   : > { %v2073_v56 = vpop.eup %2072  ;;  %v1036_v58 = vadd.f32 1.0, %v2071_v55 }
 0x197   : > { %v1035_v60 = vadd.f32 1.0, %v2073_v56  ;;  %v434_v56 = vld [vmem:[%s2637_s4] sm:$0xff] }
 0x198   : > { %v1040_v61 = vmul.f32 %v1036_v58, %v1024_v57 }
 0x199   : > { %v2075_v62 = vpop.eup %2074  ;;  %v1039_v63 = vmul.f32 %v1035_v60, %v1023_v59 }
 0x19a   : > { %v2077_v0 = vpop.eup %2076  ;;  %v1047_v2 = vsel %vm1043_vm6, %v1040_v61, 0.0  ;;  %v1038_v3 = vadd.f32 1.0, %v2075_v62  ;;  %v436_v62 = vld [vmem:[%s2639_s6] sm:$0xff] }
 0x19b   : > { %1048 = vadd.xlane.f32.xlu0 %v1047_v2  ;;  %v1044_v4 = vsel %vm1043_vm6, %v1039_v63, 0.0  ;;  %v1037_v6 = vadd.f32 1.0, %v2077_v0  ;;  %v441_v0 = vld [vmem:[%s2640_s7 + $0x8] sm:$0xff] }
 0x19c   : > { %1045 = vadd.xlane.f32.xlu1 %v1044_v4  ;;  %v1042_v7 = vmul.f32 %v1038_v3, %v1026_v1  ;;  %v443_v1 = vld [vmem:[%s2640_s7 + $0x18] sm:$0xff]  ;;  %v448_v3 = vld [vmem:[%s2643_s10 + $0x10] sm:$0xff] }
 0x19d   : > { %v1041_v8 = vmul.f32 %v1037_v6, %v1025_v5 }
 0x19e   : > { %v1053_v9 = vsel %vm1043_vm6, %v1042_v7, 0.0 }
 0x19f   : > { %v1050_v10 = vsel %vm1043_vm6, %v1041_v8, 0.0 }
 0x1a0   : > { %1051 = vadd.xlane.f32.xlu0 %v1050_v10  ;;  %1054 = vadd.xlane.f32.xlu1 %v1053_v9  ;;  %v437_v9 = vld [vmem:[%s2639_s6 + $0x8] sm:$0xff]  ;;  %v438_v10 = vld [vmem:[%s2639_s6 + $0x10] sm:$0xff] }
 0x228   : > { %v1049_v11 = vpop.xlane.xlu0 %1048 }
 0x229   : > { %v1058_v12 = vmul.f32 0.015625, %v1049_v11  ;;  %v1046_v13 = vpop.xlane.xlu1 %1045  ;;  %v439_v11 = vld [vmem:[%s2639_s6 + $0x18] sm:$0xff] }
 0x22a   : > { %v1057_v14 = vmul.f32 0.015625, %v1046_v13 }
 0x22b   : > { %v1062_v15 = vsub.f32 %v1040_v61, %v1058_v12  ;;  %v440_v61 = vld [vmem:[%s2640_s7] sm:$0xff] }
 0x22c   : > { %v1061_v16 = vsub.f32 %v1039_v63, %v1057_v14  ;;  %v442_v63 = vld [vmem:[%s2640_s7 + $0x10] sm:$0xff] }
 0x22d   : > { %v1055_v17 = vpop.xlane.xlu1 %1054  ;;  %v1052_v18 = vpop.xlane.xlu0 %1051  ;;  %v1066_v19 = vmul.f32 %v1062_v15, %v1062_v15 }
 0x22e   : > { %v1060_v20 = vmul.f32 0.015625, %v1055_v17  ;;  %v1059_v21 = vmul.f32 0.015625, %v1052_v18  ;;  %v1065_v22 = vmul.f32 %v1061_v16, %v1061_v16 }
 0x22f   : > { %v1072_v23 = vsel %vm1043_vm6, %v1066_v19, 0.0 }
 0x230   : > { %v1064_v24 = vsub.f32 %v1042_v7, %v1060_v20  ;;  %v1063_v25 = vsub.f32 %v1041_v8, %v1059_v21  ;;  %1073 = vadd.xlane.f32.xlu1 %v1072_v23  ;;  %v1069_v26 = vsel %vm1043_vm6, %v1065_v22, 0.0 }
 0x231   : > { %1070 = vadd.xlane.f32.xlu0 %v1069_v26 }
 0x232   : > { %v1068_v27 = vmul.f32 %v1064_v24, %v1064_v24  ;;  %v1067_v28 = vmul.f32 %v1063_v25, %v1063_v25 }
 0x234   : > { %v1078_v29 = vsel %vm1043_vm6, %v1068_v27, 0.0  ;;  %v1075_v30 = vsel %vm1043_vm6, %v1067_v28, 0.0 }
 0x235   : > { %1079 = vadd.xlane.f32.xlu1 %v1078_v29  ;;  %1076 = vadd.xlane.f32.xlu0 %v1075_v30 }
 0x24b   : > { %1099 = vperm.xlu0 %2068, %v435_v31  }
 0x2bd   : > { %v1074_v34 = vpop.xlane.xlu1 %1073 }
 0x2be   : > { %v1082_v35 = vmul.f32 0.015625, %v1074_v34  ;;  %v1071_v36 = vpop.xlane.xlu0 %1070 }
 0x2bf   : > { %v1081_v37 = vmul.f32 0.015625, %v1071_v36 }
 0x2c0   : > { %v1086_v38 = vadd.f32 1e-05, %v1082_v35 }
 0x2c1   : > { %v1085_v39 = vadd.f32 1e-05, %v1081_v37 }
 0x2c2   : > { %2078 = vrsqrt.f32 %v1086_v38  ;;  %v1080_v40 = vpop.xlane.xlu1 %1079  ;;  %v1077_v41 = vpop.xlane.xlu0 %1076 }
 0x2c3   : > { %2080 = vrsqrt.f32 %v1085_v39  ;;  %v1084_v42 = vmul.f32 0.015625, %v1080_v40  ;;  %v1083_v43 = vmul.f32 0.015625, %v1077_v41 }
 0x2c5   : > { %v1088_v44 = vadd.f32 1e-05, %v1084_v42  ;;  %v1087_v45 = vadd.f32 1e-05, %v1083_v43 }
 0x2c7   : > { %2082 = vrsqrt.f32 %v1088_v44 }
 0x2c8   : > { %2084 = vrsqrt.f32 %v1087_v45 }
 0x2ca   : > { %v1100_v57 = vpop.permute.xlu0 %1099 }
 0x2cc   : > { %v2079_v46 = vpop.eup %2078 }
 0x2cd   : > { %v2081_v47 = vpop.eup %2080  ;;  %v2441_v48 = vmul.f32 %v2079_v46, %v1062_v15 }
 0x2ce   : > { %v2443_v49 = vmul.f32 %v2081_v47, %v1061_v16 }
 0x2d0   : > { %v1965_v50 = vpack.c.bf16 %v2441_v48, %v2443_v49 }
 0x2d1   : > { %v2083_v51 = vpop.eup %2082 }
 0x2d2   : > { %v2085_v52 = vpop.eup %2084  ;;  %1966 = vmatpush3.bf16.msra.mxu1 %v1965_v50  ;;  %v2447_v53 = vmul.f32 %v2083_v51, %v1064_v24 }
 0x2d3   : > { %1967 = vmatprep.subr.bf16.mxu1 %v2187_v32  ;;  %v2450_v54 = vmul.f32 %v2085_v52, %v1063_v25 }
 0x2d5   : > { %v1968_v55 = vpack.c.bf16 %v2447_v53, %v2450_v54 }
 0x2d7   : > { %1969 = vmatpush3.bf16.msra.mxu1 %v1968_v55 }
 0x2da   : > { %1919 = vmatmul.mubr.msk.f32.vlgmr.msra.gmra.mrb[0].mxu1 %vm1102_vm8, %v434_v56 }
 0x2db   : > { %1931 = vmatprep.mubr.msk.f32.mxu1 %vm1213_vm9, %v436_v62 }
 0x3ad   : > { %v1172_v58 = vpop.f32.mrb[0].mxu1 }
 0x3ae   : > { %v1173_v59 = vadd.f32 %v1172_v58, %v1100_v57  ;;  %v1920_v60 = vpop.f32.mrb[1].mxu1 }
 0x3b0   : > { %1185 = vrot.lane.b32.xlu0 %v1173_v59, %s2183_s29  ;;  %1177 = vrot.lane.b32.xlu1 %v1173_v59, %s2184_s30 }
 0x3b4   : > { %1195 = vperm.xlu0 %2068, %v440_v61   ;;  %1181 = vrot.lane.b32.xlu1 %v1173_v59, %s2652_s23  ;;  %s1695_s23 = sshll.u32 %s404_s26, 4  ;;  %s2588_s23 = int_to_ptr.vmem [resolvable:$true] %s1695_s23 }
 0x3b5   : > { %s2118_s29 = scalar_lea.vmem %s2588_s23, 512  ;;  %p2125_p0 = scmp.lt.s32.totalorder %s2588_s23, %s2123_s28 }
 0x3b6   : > { %p2119_p11 = scmp.ne.s32.totalorder %s2588_s23, %s2118_s29  ;;  %p2126_p1 = scmp.lt.s32.totalorder %s2124_s20, %s2118_s29 }
 0x3b8   : > { %1205 = vperm.xlu0 %2068, %v442_v63   ;;  %1189 = vrot.lane.b32.xlu1 %v1173_v59, %s2185_s15  ;;  %p2120_p12 = pnand %p2119_p11, %p2299_p5  ;;  %p2127_p2 = por %p2126_p1, %p2125_p0 }
 0x3ba   : > { %p2121_p13 = pneg %p2120_p12 }
 0x3bc   : > { %1200 = vperm.xlu1 %2069, %v441_v0   ;;  %p2128_p3 = pnand %p2127_p2, %p2121_p13 }
 0x3c0   : > { %1210 = vperm.xlu1 %2069, %v443_v1  }
 0x422   : > { %v1178_v2 = vpop.permute.xlu1 %1177  ;;  %v1186_v4 = vpop.permute.xlu0 %1185 }
 0x423   : > { %v1976_v7 = vpack.c.bf16 %v1186_v4, %v1173_v59 }
 0x426   : > { %v1182_v5 = vpop.permute.xlu1 %1181 }
 0x427   : > { %v1970_v6 = vpack.c.bf16 %v1182_v5, %v1178_v2 }
 0x429   : > { %1972 = vmatprep.subr.msk.bf16.mxu1 %vm1971_vm12, %v1970_v6 }
 0x42a   : > { %1975 = vmatpush3.bf16.msk.msra.mxu1 %vm1971_vm12, %v1970_v6  ;;  %v1190_v8 = vpop.permute.xlu1 %1189 }
 0x42b   : > { %1978 = vmatprep.subr.msk.bf16.mxu1 %vm1977_vm14, %v1976_v7 }
 0x42e   : > { %1981 = vmatpush3.bf16.msk.msra.mxu1 %vm1977_vm14, %v1976_v7 }
 0x42f   : > { %1929 = vmatprep.subr.msk.mxu1 %vm883_vm5, %v1190_v8 }
 0x432   : > { %1930 = vmatpush3.msk.msra.mxu1 %vm883_vm5, %v1190_v8 }
 0x433   : > { %1932 = vmatmul.mubr.msk.f32.vlgmr.msra.gmra.mrb[2].mxu1 %vm1213_vm9, %v437_v9  ;;  %1982 = vmatprep.subr.bf16.mxu1 %v2187_v32  ;;  %v1196_v13 = vpop.permute.xlu0 %1195 }
 0x434   : > { %1934 = vmatprep.mubr.msk.f32.mxu1 %vm1213_vm9, %v438_v10  ;;  %v445_v10 = vld [vmem:[%s2642_s9] sm:$0xff] }
 0x437   : > { %1935 = vmatmul.mubr.msk.f32.gmra.mrb[4].mxu1 %vm1213_vm9, %v439_v11  ;;  %v1206_v22 = vpop.permute.xlu0 %1205 }
 0x438   : > { %1945 = vmatprep.mubr.msk.f32.mxu1 %vm2188_vm7, %v2189_v33 }
 0x43b   : > { %v1201_v12 = vpop.permute.xlu1 %1200 }
 0x43f   : > { %v1211_v19 = vpop.permute.xlu1 %1210 }
 0x506   : > { %v1933_v14 = vpop.f32.mrb[2].mxu1 }
 0x507   : > { %v1298_v15 = vadd.f32 %v1933_v14, %v1201_v12  ;;  %v1292_v16 = vpop.f32.mrb[3].mxu1 }
 0x508   : > { %v1293_v17 = vadd.f32 %v1292_v16, %v1196_v13 }
 0x509   : > { %v1312_v18 = vadd.f32 %v1298_v15, %v2441_v48 }
 0x50a   : > { %v1311_v20 = vadd.f32 %v1293_v17, %v2443_v49  ;;  %v1936_v21 = vpop.f32.mrb[4].mxu1 }
 0x50b   : > { %v1320_v23 = vmul.f32 0.70710677, %v1312_v18  ;;  %v1308_v24 = vadd.f32 %v1936_v21, %v1211_v19  ;;  %v1302_v25 = vpop.f32.mrb[5].mxu1  ;;  %v1316_v35 = vmul.f32 0.5, %v1312_v18 }
 0x50c   : > { %v1319_v26 = vmul.f32 0.70710677, %v1311_v20  ;;  %v1303_v27 = vadd.f32 %v1302_v25, %v1206_v22  ;;  %v1315_v37 = vmul.f32 0.5, %v1311_v20 }
 0x50d   : > { %2086 = verf.f32 %v1320_v23  ;;  %v1314_v28 = vadd.f32 %v1308_v24, %v2447_v53 }
 0x50e   : > { %2088 = verf.f32 %v1319_v26  ;;  %v1313_v29 = vadd.f32 %v1303_v27, %v2450_v54 }
 0x50f   : > { %v1322_v30 = vmul.f32 0.70710677, %v1314_v28  ;;  %v1318_v49 = vmul.f32 0.5, %v1314_v28 }
 0x510   : > { %v1321_v31 = vmul.f32 0.70710677, %v1313_v29  ;;  %v1317_v45 = vmul.f32 0.5, %v1313_v29 }
 0x511   : > { %2090 = verf.f32 %v1322_v30 }
 0x512   : > { %2092 = verf.f32 %v1321_v31 }
 0x517   : > { %v2087_v33 = vpop.eup %2086 }
 0x518   : > { %v2089_v34 = vpop.eup %2088  ;;  %v1328_v36 = vadd.f32 1.0, %v2087_v33 }
 0x519   : > { %v1327_v38 = vadd.f32 1.0, %v2089_v34  ;;  %v444_v34 = vld [vmem:[%s2641_s8] sm:$0xff] }
 0x51a   : > { %v1332_v39 = vmul.f32 %v1328_v36, %v1316_v35 }
 0x51b   : > { %v2091_v40 = vpop.eup %2090  ;;  %v1331_v41 = vmul.f32 %v1327_v38, %v1315_v37 }
 0x51c   : > { %v2093_v42 = vpop.eup %2092  ;;  %v1338_v43 = vsel %vm1043_vm6, %v1332_v39, 0.0  ;;  %v1330_v47 = vadd.f32 1.0, %v2091_v40  ;;  %v451_v40 = vld [vmem:[%s2644_s11 + $0x8] sm:$0xff] }
 0x51d   : > { %1339 = vadd.xlane.f32.xlu1 %v1338_v43  ;;  %v1335_v44 = vsel %vm1043_vm6, %v1331_v41, 0.0  ;;  %v1329_v46 = vadd.f32 1.0, %v2093_v42  ;;  %v453_v42 = vld [vmem:[%s2644_s11 + $0x18] sm:$0xff] }
 0x51e   : > { %1336 = vadd.xlane.f32.xlu0 %v1335_v44  ;;  %v1334_v51 = vmul.f32 %v1330_v47, %v1318_v49  ;;  %v447_v49 = vld [vmem:[%s2643_s10 + $0x8] sm:$0xff] }
 0x51f   : > { %v1333_v48 = vmul.f32 %v1329_v46, %v1317_v45 }
 0x520   : > { %v1344_v52 = vsel %vm1043_vm6, %v1334_v51, 0.0 }
 0x521   : > { %v1341_v50 = vsel %vm1043_vm6, %v1333_v48, 0.0 }
 0x522   : > { %1342 = vadd.xlane.f32.xlu0 %v1341_v50  ;;  %v449_v50 = vld [vmem:[%s2643_s10 + $0x18] sm:$0xff] }
 0x526   : > { %1345 = vadd.xlane.f32.xlu0 %v1344_v52 }
 0x5aa   : > { %v1340_v53 = vpop.xlane.xlu1 %1339 }
 0x5ab   : > { %v1348_v54 = vmul.f32 0.015625, %v1340_v53  ;;  %v1337_v55 = vpop.xlane.xlu0 %1336 }
 0x5ac   : > { %v1347_v56 = vmul.f32 0.015625, %v1337_v55 }
 0x5ad   : > { %v1352_v57 = vsub.f32 %v1332_v39, %v1348_v54  ;;  %v450_v39 = vld [vmem:[%s2644_s11] sm:$0xff] }
 0x5ae   : > { %v1351_v58 = vsub.f32 %v1331_v41, %v1347_v56  ;;  %v452_v41 = vld [vmem:[%s2644_s11 + $0x10] sm:$0xff] }
 0x5af   : > { %v1343_v59 = vpop.xlane.xlu0 %1342  ;;  %v1356_v60 = vmul.f32 %v1352_v57, %v1352_v57 }
 0x5b0   : > { %v1349_v61 = vmul.f32 0.015625, %v1343_v59  ;;  %v1355_v62 = vmul.f32 %v1351_v58, %v1351_v58 }
 0x5b1   : > { %v1362_v63 = vsel %vm1043_vm6, %v1356_v60, 0.0 }
 0x5b2   : > { %v1353_v0 = vsub.f32 %v1333_v48, %v1349_v61  ;;  %1363 = vadd.xlane.f32.xlu0 %v1362_v63  ;;  %v1359_v1 = vsel %vm1043_vm6, %v1355_v62, 0.0 }
 0x5b3   : > { %1360 = vadd.xlane.f32.xlu1 %v1359_v1  ;;  %v1346_v2 = vpop.xlane.xlu0 %1345 }
 0x5b4   : > { %v1350_v4 = vmul.f32 0.015625, %v1346_v2  ;;  %v1357_v5 = vmul.f32 %v1353_v0, %v1353_v0 }
 0x5b6   : > { %v1354_v6 = vsub.f32 %v1334_v51, %v1350_v4  ;;  %v1365_v7 = vsel %vm1043_vm6, %v1357_v5, 0.0 }
 0x5b7   : > { %1366 = vadd.xlane.f32.xlu1 %v1365_v7 }
 0x5b8   : > { %v1358_v8 = vmul.f32 %v1354_v6, %v1354_v6 }
 0x5ba   : > { %v1368_v9 = vsel %vm1043_vm6, %v1358_v8, 0.0 }
 0x5bb   : > { %1369 = vadd.xlane.f32.xlu0 %v1368_v9 }
 0x5c8   : > { %1389 = vperm.xlu1 %2069, %v445_v10  }
 0x63f   : > { %v1364_v11 = vpop.xlane.xlu0 %1363 }
 0x640   : > { %v1372_v12 = vmul.f32 0.015625, %v1364_v11  ;;  %v1361_v13 = vpop.xlane.xlu1 %1360 }
 0x641   : > { %v1371_v14 = vmul.f32 0.015625, %v1361_v13 }
 0x642   : > { %v1376_v15 = vadd.f32 1e-05, %v1372_v12 }
 0x643   : > { %v1375_v16 = vadd.f32 1e-05, %v1371_v14 }
 0x644   : > { %2094 = vrsqrt.f32 %v1376_v15  ;;  %v1367_v17 = vpop.xlane.xlu1 %1366 }
 0x645   : > { %2096 = vrsqrt.f32 %v1375_v16  ;;  %v1373_v18 = vmul.f32 0.015625, %v1367_v17 }
 0x647   : > { %v1377_v19 = vadd.f32 1e-05, %v1373_v18 }
 0x648   : > { %v1370_v20 = vpop.xlane.xlu0 %1369  ;;  %v1390_v35 = vpop.permute.xlu1 %1389 }
 0x649   : > { %v1374_v21 = vmul.f32 0.015625, %v1370_v20  ;;  %2098 = vrsqrt.f32 %v1377_v19 }
 0x64b   : > { %v1378_v22 = vadd.f32 1e-05, %v1374_v21 }
 0x64d   : > { %2100 = vrsqrt.f32 %v1378_v22 }
 0x64e   : > { %v2095_v23 = vpop.eup %2094 }
 0x64f   : > { %v2097_v24 = vpop.eup %2096  ;;  %v1384_v25 = vmul.f32 %v2095_v23, %v1352_v57 }
 0x650   : > { %v2520_v26 = vmul.f32 %v2097_v24, %v1351_v58 }
 0x652   : > { %v1983_v27 = vpack.c.bf16 %v1384_v25, %v2520_v26 }
 0x653   : > { %v2099_v28 = vpop.eup %2098 }
 0x654   : > { %1984 = vmatpush3.bf16.msra.mxu1 %v1983_v27  ;;  %v2524_v30 = vmul.f32 %v2099_v28, %v1353_v0 }
 0x655   : > { %1985 = vmatprep.subr.bf16.mxu1 %v2187_v32  ;;  %v446_v32 = vld [vmem:[%s2643_s10] sm:$0xff] }
 0x657   : > { %v2101_v29 = vpop.eup %2100 }
 0x658   : > { %v2526_v31 = vmul.f32 %v2101_v29, %v1354_v6 }
 0x65a   : > { %v1986_v33 = vpack.c.bf16 %v2526_v31, %v2524_v30 }
 0x65c   : > { %1987 = vmatpush3.bf16.msra.mxu1 %v1986_v33 }
 0x65f   : > { %1946 = vmatmul.mubr.msk.f32.vlgmr.msra.gmra.mrb[6].mxu1 %vm1102_vm8, %v444_v34 }
 0x660   : > { %1958 = vmatprep.mubr.msk.f32.mxu1 %vm1213_vm9, %v446_v32 }
 0x732   : > { %v1461_v36 = vpop.f32.mrb[6].mxu1 }
 0x733   : > { %v1462_v37 = vadd.f32 %v1461_v36, %v1390_v35  ;;  %v1947_v38 = vpop.f32.mrb[7].mxu1 }
 0x735   : > { %1471 = vrot.lane.b32.xlu1 %v1462_v37, %s2184_s30  ;;  %1466 = vrot.lane.b32.xlu0 %v1462_v37, %s2191_s16  ;;  %s1816_s30 = sshll.u32 %s2282_s25, 9  ;;  %s2592_s25 = scalar_lea.sflag [#allocation3], %s402_s18 }
 0x739   : > { %1475 = vrot.lane.b32.xlu1 %v1462_v37, %s2185_s15  ;;  %1479 = vrot.lane.b32.xlu0 %v1462_v37, %s2192_s17  ;;  %s2586_s17 = scalar_lea.hbm %s2645_s12, %s1816_s30 }
 0x73d   : > { %1486 = vperm.xlu1 %2069, %v450_v39   ;;  %1491 = vperm.xlu0 %2068, %v451_v40  }
 0x741   : > { %1496 = vperm.xlu1 %2069, %v452_v41   ;;  %1501 = vperm.xlu0 %2068, %v453_v42  }
 0x7a7   : > { %v1472_v43 = vpop.permute.xlu1 %1471  ;;  %v1467_v44 = vpop.permute.xlu0 %1466 }
 0x7a8   : > { %v1988_v45 = vpack.c.bf16 %v1472_v43, %v1467_v44 }
 0x7aa   : > { %1990 = vmatprep.subr.msk.bf16.mxu1 %vm1989_vm1, %v1988_v45 }
 0x7ab   : > { %v1476_v46 = vpop.permute.xlu1 %1475  ;;  %1993 = vmatpush3.bf16.msk.msra.mxu1 %vm1989_vm1, %v1988_v45  ;;  %v1480_v48 = vpop.permute.xlu0 %1479 }
 0x7ac   : > { %v1994_v47 = vpack.c.bf16 %v1476_v46, %v1462_v37 }
 0x7ae   : > { %1996 = vmatprep.subr.msk.bf16.mxu1 %vm1995_vm2, %v1994_v47 }
 0x7af   : > { %1999 = vmatpush3.bf16.msk.msra.mxu1 %vm1995_vm2, %v1994_v47 }
 0x7b0   : > { %1956 = vmatprep.subr.msk.mxu1 %vm1482_vm3, %v1480_v48 }
 0x7b3   : > { %1957 = vmatpush3.msk.msra.mxu1 %vm1482_vm3, %v1480_v48 }
 0x7b4   : > { %1959 = vmatmul.mubr.msk.f32.vlgmr.msra.gmra.mrb[8].mxu1 %vm1213_vm9, %v447_v49 }
 0x7b5   : > { %1961 = vmatprep.mubr.msk.f32.mxu1 %vm1213_vm9, %v448_v3 }
 0x7b8   : > { %1962 = vmatmul.mubr.msk.f32.gmra.mrb[10].mxu1 %vm1213_vm9, %v449_v50 }
 0x7bc   : > { %v1492_v51 = vpop.permute.xlu0 %1491  ;;  %v1487_v52 = vpop.permute.xlu1 %1486 }
 0x7c0   : > { %v1502_v58 = vpop.permute.xlu0 %1501  ;;  %v1497_v61 = vpop.permute.xlu1 %1496 }
 0x887   : > { %v1960_v53 = vpop.f32.mrb[8].mxu1 }
 0x888   : > { %v1588_v54 = vadd.f32 %v1960_v53, %v1492_v51  ;;  %v1582_v55 = vpop.f32.mrb[9].mxu1 }
 0x889   : > { %v1583_v56 = vadd.f32 %v1582_v55, %v1487_v52 }
 0x88a   : > { %v1602_v57 = vadd.f32 %v1588_v54, %v1384_v25 }
 0x88b   : > { %v1601_v59 = vadd.f32 %v1583_v56, %v2520_v26  ;;  %v1963_v60 = vpop.f32.mrb[10].mxu1 }
 0x88c   : > { %v1610_v62 = vmul.f32 0.70710677, %v1602_v57  ;;  %v1598_v63 = vadd.f32 %v1963_v60, %v1502_v58  ;;  %v1592_v0 = vpop.f32.mrb[11].mxu1  ;;  %v1606_v10 = vmul.f32 0.5, %v1602_v57 }
 0x88d   : > { %v1609_v1 = vmul.f32 0.70710677, %v1601_v59  ;;  %v1593_v2 = vadd.f32 %v1592_v0, %v1497_v61  ;;  %v1605_v12 = vmul.f32 0.5, %v1601_v59 }
 0x88e   : > { %2102 = verf.f32 %v1610_v62  ;;  %v1604_v4 = vadd.f32 %v1598_v63, %v2526_v31 }
 0x88f   : > { %2104 = verf.f32 %v1609_v1  ;;  %v1603_v5 = vadd.f32 %v1593_v2, %v2524_v30 }
 0x890   : > { %v1612_v6 = vmul.f32 0.70710677, %v1604_v4  ;;  %v1608_v19 = vmul.f32 0.5, %v1604_v4 }
 0x891   : > { %v1611_v7 = vmul.f32 0.70710677, %v1603_v5  ;;  %v1607_v22 = vmul.f32 0.5, %v1603_v5 }
 0x892   : > { %2106 = verf.f32 %v1612_v6 }
 0x893   : > { %2108 = verf.f32 %v1611_v7 }
 0x898   : > { %v2103_v8 = vpop.eup %2102 }
 0x899   : > { %v2105_v9 = vpop.eup %2104  ;;  %v1618_v11 = vadd.f32 1.0, %v2103_v8 }
 0x89a   : > { %v1617_v13 = vadd.f32 1.0, %v2105_v9 }
 0x89b   : > { %v1622_v14 = vmul.f32 %v1618_v11, %v1606_v10 }
 0x89c   : > { %v2107_v15 = vpop.eup %2106  ;;  %v1621_v16 = vmul.f32 %v1617_v13, %v1605_v12 }
 0x89d   : > { %v2109_v17 = vpop.eup %2108  ;;  %v1628_v18 = vsel %vm1043_vm6, %v1622_v14, 0.0  ;;  %v1620_v20 = vadd.f32 1.0, %v2107_v15 }
 0x89e   : > { %1629 = vadd.xlane.f32.xlu0 %v1628_v18  ;;  %v1625_v21 = vsel %vm1043_vm6, %v1621_v16, 0.0  ;;  %v1619_v23 = vadd.f32 1.0, %v2109_v17 }
 0x89f   : > { %1626 = vadd.xlane.f32.xlu1 %v1625_v21  ;;  %v1624_v24 = vmul.f32 %v1620_v20, %v1608_v19 }
 0x8a0   : > { %v1623_v25 = vmul.f32 %v1619_v23, %v1607_v22 }
 0x8a1   : > { %v1634_v26 = vsel %vm1043_vm6, %v1624_v24, 0.0 }
 0x8a2   : > { %v1631_v27 = vsel %vm1043_vm6, %v1623_v25, 0.0 }
 0x8a3   : > { %1632 = vadd.xlane.f32.xlu0 %v1631_v27  ;;  %1635 = vadd.xlane.f32.xlu1 %v1634_v26 }
 0x92b   : > { %v1630_v28 = vpop.xlane.xlu0 %1629 }
 0x92c   : > { %v1638_v29 = vmul.f32 0.015625, %v1630_v28  ;;  %v1627_v30 = vpop.xlane.xlu1 %1626 }
 0x92d   : > { %v1637_v31 = vmul.f32 0.015625, %v1627_v30 }
 0x92e   : > { %v1642_v33 = vsub.f32 %v1622_v14, %v1638_v29 }
 0x92f   : > { %v1641_v34 = vsub.f32 %v1621_v16, %v1637_v31 }
 0x930   : > { %v1636_v35 = vpop.xlane.xlu1 %1635  ;;  %v1633_v36 = vpop.xlane.xlu0 %1632  ;;  %v1646_v32 = vmul.f32 %v1642_v33, %v1642_v33 }
 0x931   : > { %v1640_v37 = vmul.f32 0.015625, %v1636_v35  ;;  %v1639_v38 = vmul.f32 0.015625, %v1633_v36  ;;  %v1645_v39 = vmul.f32 %v1641_v34, %v1641_v34 }
 0x932   : > { %v1652_v40 = vsel %vm1043_vm6, %v1646_v32, 0.0 }
 0x933   : > { %v1644_v41 = vsub.f32 %v1624_v24, %v1640_v37  ;;  %v1643_v42 = vsub.f32 %v1623_v25, %v1639_v38  ;;  %1653 = vadd.xlane.f32.xlu1 %v1652_v40  ;;  %v1649_v43 = vsel %vm1043_vm6, %v1645_v39, 0.0 }
 0x934   : > { %1650 = vadd.xlane.f32.xlu0 %v1649_v43 }
 0x935   : > { %v1648_v44 = vmul.f32 %v1644_v41, %v1644_v41  ;;  %v1647_v45 = vmul.f32 %v1643_v42, %v1643_v42 }
 0x937   : > { %v1658_v46 = vsel %vm1043_vm6, %v1648_v44, 0.0  ;;  %v1655_v47 = vsel %vm1043_vm6, %v1647_v45, 0.0 }
 0x938   : > { %1659 = vadd.xlane.f32.xlu1 %v1658_v46  ;;  %1656 = vadd.xlane.f32.xlu0 %v1655_v47 }
 0x9c0   : > { %v1654_v48 = vpop.xlane.xlu1 %1653 }
 0x9c1   : > { %v1662_v49 = vmul.f32 0.015625, %v1654_v48  ;;  %v1651_v3 = vpop.xlane.xlu0 %1650 }
 0x9c2   : > { %v1661_v50 = vmul.f32 0.015625, %v1651_v3 }
 0x9c3   : > { %v1666_v51 = vadd.f32 1e-05, %v1662_v49 }
 0x9c4   : > { %v1665_v52 = vadd.f32 1e-05, %v1661_v50 }
 0x9c5   : > { %2110 = vrsqrt.f32 %v1666_v51  ;;  %v1660_v53 = vpop.xlane.xlu1 %1659  ;;  %v1657_v54 = vpop.xlane.xlu0 %1656 }
 0x9c6   : > { %2112 = vrsqrt.f32 %v1665_v52  ;;  %v1664_v55 = vmul.f32 0.015625, %v1660_v53  ;;  %v1663_v56 = vmul.f32 0.015625, %v1657_v54 }
 0x9c8   : > { %v1668_v57 = vadd.f32 1e-05, %v1664_v55  ;;  %v1667_v58 = vadd.f32 1e-05, %v1663_v56 }
 0x9ca   : > { %2114 = vrsqrt.f32 %v1668_v57 }
 0x9cb   : > { %2116 = vrsqrt.f32 %v1667_v58 }
 0x9cf   : > { %v2111_v59 = vpop.eup %2110 }
 0x9d0   : > { %v2113_v60 = vpop.eup %2112  ;;  %v1674_v61 = vmul.f32 %v2111_v59, %v1642_v33 }
 0x9d1   : > { %v1673_v62 = vmul.f32 %v2113_v60, %v1641_v34 }
 0x9d2   : > { %1678 = vst.msk [vmem:[%s404_s26 + $0x8] sm:$0xff] %vm1043_vm6, %v1674_v61 }
 0x9d3   : > { %1677 = vst.msk [vmem:[%s404_s26] sm:$0xff] %vm1043_vm6, %v1673_v62 }
 0x9d4   : > { %v2115_v63 = vpop.eup %2114 }
 0x9d5   : > { %v2117_v0 = vpop.eup %2116  ;;  %v1676_v1 = vmul.f32 %v2115_v63, %v1644_v41 }
 0x9d6   : > { %v1675_v2 = vmul.f32 %v2117_v0, %v1643_v42 }
 0x9d7   : > { %1680 = vst.msk [vmem:[%s404_s26 + $0x18] sm:$0xff] %vm1043_vm6, %v1676_v1 }
 0x9d8   : > { %1679 = vst.msk [vmem:[%s404_s26 + $0x10] sm:$0xff] %vm1043_vm6, %v1675_v2 }
 0x9d9   : > { %2131 = shalt.err (!%p2128_p3)
}
 0x9da   : > { %s2132_s18 = scalar_lea.hbm %s2586_s17, 512  ;;  %s2136_s15 = scalar_lea.hbm %s2645_s12, 1024 }
 0x9db   : > { %p2133_p4 = scmp.ne.s32.totalorder %s2586_s17, %s2132_s18  ;;  %p2137_p9 = scmp.lt.u32.totalorder %s2586_s17, %s2645_s12 }
 0x9dc   : > { %p2138_p10 = scmp.lt.u32.totalorder %s2136_s15, %s2132_s18  ;;  %p2140_p12 = scmp.lt.u32.totalorder %s2132_s18, %s2586_s17 }
 0x9dd   : > { %p2134_p7 = pnand %p2133_p4, %p2299_p5 }
 0x9de   : > { %p2139_p11 = por %p2138_p10, %p2137_p9 }
 0x9df   : > { %p2135_p8 = pneg %p2134_p7 }
 0x9e0   : > { %p2141_p13 = por %p2140_p12, %p2139_p11 }
 0x9e2   : > { %p2142_p0 = pnand %p2141_p13, %p2135_p8 }
 0x9e4   : > { %2145 = shalt.err (!%p2142_p0)
}
 0x9e5   : > { %s2194_s29 = smov 128   ;;  %s2195_s28 = smov 8  }
 0x9e6   : > { %2016 = dma.vmem_to_hbm [thread:$0]  (%p2299_p5), %s2588_s23, 512, %s2586_s17, %s2592_s25, %s2194_s29, %s2194_s29, %s2195_s28  }
 0x9e7 PF: > { %p2022_p1 = scmp.ge.s32.totalorder %s2180_s24, 2  ;;  %s1710_s20 = sand.u32 1, %s2168_s21  }
 0x9e8   : > { %s1711_s18 = scalar_lea.sflag [#allocation3], %s1710_s20 }
 0x9e9   : > { %p2019_p2 = pnand %p2022_p1, %p2303_p6 }
 0x9eb   : > { %2163 = dma.done.wait (!%p2019_p2), %s1711_s18, 512  }
 0x9ec   : > { %2165 = vsyncadd (!%p2019_p2), %s1711_s18, 4294966784  ;;  %s2655_s26 = sld [smem:[#allocation5_spill]]  ;;  %s2656_s23 = sld [smem:[#allocation6_spill]] }
 0x9ed   : > { %p22_p3 = scmp.ge.s32.totalorder %s2286_s27, 4   ;;  %s2657_s21 = smov %s2172_s22 }
 0x9ee   : > { %s2659_s24 = smov %s2286_s27 }
 0x9ef   :  { %24 = sbr.rel (!%p22_p3) target bundleno = 3 (0x3), region = 103 }
 0x9f2   : > { %s2658_s22 = smov %s2655_s26 }
 0x9f6   :  { %1716 = vsyncpa [#allocation3], 1 }
 0x9f7   :  { %1718 = vsyncpa [#allocation3 + $0x1], 1 }

</bundles_post_ra>
